<compile_context>
chip_gen: v5e
topology: v5e:2x2
jax: 0.10.0
libtpu: 0.0.40
codegen_flags: <defaults>
</compile_context>

<pallas_src>
import functools

import jax
import jax.numpy as jnp
from jax import lax
from jax.experimental import pallas as pl
from jax.experimental.pallas import tpu as pltpu

# ----------------------------- configuration -------------------------------
# Matches the synthetic-reward instance of NGramConvolutionalNetwork:
#   state_dim=8, action_dim=8, context_size=5,
#   conv_dims=[8, 4], conv_height_kernels=[3, 2], conv_width_kernels=[16, 1],
#   pool_types=['max', 'max'], pool_kernel_sizes=[1, 1]   (pool k=1 -> identity),
#   sizes=[32, 16], activations=['relu', 'relu'], last_layer_activation='sigmoid'.
STATE_DIM = 8
ACTION_DIM = 8
D = STATE_DIM + ACTION_DIM        # input_width (feature dim) = 16
CONTEXT = 5                       # input_height (must be odd)
HALF = CONTEXT // 2
KH1, KH2 = 3, 2                   # conv height kernels
C1, C2 = 8, 4                     # conv output channels
H1 = CONTEXT - KH1 + 1            # 3
H2 = H1 - KH2 + 1                 # 2
FC_IN = C2 * H2                   # 8
SIZES = [32, 16]                  # hidden FC sizes; final layer -> 1, sigmoid

SEQ_LEN = 16
BATCH = 8                         # B % 8 == 0 keeps context row shifts sublane aligned

# ---------------------- single packed parameter slab ------------------------
# One lane-dense bf16 slab (SLAB_ROWS, 128).  Row/column map (the kernel relies on it):
#   rows [0, 80)  cols [ 0, 24): conv1 folded into a banded (CONTEXT*D, H1*C1) matmul
#   rows [0, 24)  cols [24, 32): conv2 folded into a banded (H1*C1,    H2*C2) matmul
#   rows [0,  8)  cols [32, 64): FC0 weight (rows pre-permuted to (h2, c2) order)
#   rows [0, 32)  cols [64, 80): FC1 weight
#   row  80       cols [ 0, 24): conv1 bias, tiled over H1
#   row  81       cols [ 0,  8): conv2 bias, tiled over H2
#   row  82       cols [ 0, 32): FC0 bias
#   row  83       cols [ 0, 16): FC1 bias
#   row  84       col   0      : FC2 bias
#   row  85       cols [ 0, 16): FC2 weight stored as a ROW, so the last layer runs
#                                as w_row @ h^T and the output stays lane dense.
W1_C0, W1_C1 = 0, H1 * C1                       # [0, 24)
W2_C0, W2_C1 = W1_C1, W1_C1 + H2 * C2           # [24, 32)
F0_C0, F0_C1 = W2_C1, W2_C1 + SIZES[0]          # [32, 64)
F1_C0, F1_C1 = F0_C1, F0_C1 + SIZES[1]          # [64, 80)
W_ROWS = CONTEXT * D                            # 80 (tallest weight block)
B1_ROW, B2_ROW = W_ROWS, W_ROWS + 1             # 80, 81
FB0_ROW, FB1_ROW, FB2_ROW, FW2_ROW = 82, 83, 84, 85
SLAB_ROWS = 88                                  # pad rows to a sublane multiple
SLAB_COLS = 128                                 # one full lane tile


# ------------------------------ Pallas kernel -------------------------------
def _ngram_conv_kernel(s_ref, a_ref, w_ref, out_ref, *, batch):
    """Whole NGram conv net for one row tile; rows are (seq, batch) flattened."""
    n = s_ref.shape[0]
    f32, bf16 = jnp.float32, jnp.bfloat16

    # Fused ngram: concat(state, action) and build the CONTEXT window in vregs as a
    # value-level concat of row-shifted slices (zero rows stand in for ngram padding).
    x = jnp.concatenate([s_ref[...], a_ref[...]], axis=-1)            # (n, D) f32

    def shifted(off):
        if off < 0:
            return jnp.concatenate(
                [jnp.zeros((-off, D), f32), x[: n + off, :]], axis=0)
        if off > 0:
            return jnp.concatenate(
                [x[off:, :], jnp.zeros((off, D), f32)], axis=0)
        return x

    h = jnp.concatenate([shifted((i - HALF) * batch) for i in range(CONTEXT)],
                        axis=-1).astype(bf16)                          # (n, CONTEXT*D)

    # conv1 (banded matmul) + bias + ReLU; max-pool(k=1) is the identity.
    h = jnp.dot(h, w_ref[0:CONTEXT * D, W1_C0:W1_C1], preferred_element_type=f32)
    h = jnp.maximum(h + w_ref[B1_ROW:B1_ROW + 1, 0:H1 * C1].astype(f32), 0.0)

    # conv2 (banded matmul) + bias + ReLU; max-pool(k=1) is the identity.
    h = jnp.dot(h.astype(bf16), w_ref[0:H1 * C1, W2_C0:W2_C1],
                preferred_element_type=f32)
    h = jnp.maximum(h + w_ref[B2_ROW:B2_ROW + 1, 0:H2 * C2].astype(f32), 0.0)

    # FC0 + ReLU.
    h = jnp.dot(h.astype(bf16), w_ref[0:FC_IN, F0_C0:F0_C1],
                preferred_element_type=f32)
    h = jnp.maximum(h + w_ref[FB0_ROW:FB0_ROW + 1, 0:SIZES[0]].astype(f32), 0.0)

    # FC1 + ReLU.
    h = jnp.dot(h.astype(bf16), w_ref[0:SIZES[0], F1_C0:F1_C1],
                preferred_element_type=f32)
    h = jnp.maximum(h + w_ref[FB1_ROW:FB1_ROW + 1, 0:SIZES[1]].astype(f32), 0.0)

    # FC2 (single output): w_row @ h^T so the result is lane-dense (1, n).
    # The implicit transpose of h is only 16 lanes wide -> tiny XLU cost per tile.
    y = lax.dot_general(w_ref[FW2_ROW:FW2_ROW + 1, 0:SIZES[1]], h.astype(bf16),
                        (((1,), (1,)), ((), ())), preferred_element_type=f32)
    out_ref[...] = jax.nn.sigmoid(y + w_ref[FB2_ROW:FB2_ROW + 1, 0:1].astype(f32))


# --------------------------- weight slab packing -----------------------------
def pack_params(params):
    """Fold the conv layers into banded matmul weights and pack every layer into one
    lane-dense bf16 slab.  Call ONCE when params change; do NOT call per forward."""
    # conv1: out column (h, c1) <- context position i = h + kh, feature d.
    w1_kdc = params["w1"][:, 0, :, :].transpose(1, 2, 0)              # (KH1, D, C1)
    w1b = jnp.zeros((CONTEXT * D, H1 * C1), jnp.float32)
    for h in range(H1):
        for kh in range(KH1):
            i = h + kh
            w1b = w1b.at[i * D:(i + 1) * D, h * C1:(h + 1) * C1].set(w1_kdc[kh])

    # conv2: out column (p, c2) <- input column (p + r, c1).
    w2_rcc = params["w2"][:, :, :, 0].transpose(2, 1, 0)              # (KH2, C1, C2)
    w2b = jnp.zeros((H1 * C1, H2 * C2), jnp.float32)
    for p in range(H2):
        for r in range(KH2):
            w2b = w2b.at[(p + r) * C1:(p + r + 1) * C1,
                         p * C2:(p + 1) * C2].set(w2_rcc[r])

    # PyTorch flattens the conv output as c2*H2 + h2; our columns use h2*C2 + c2.
    perm = jnp.array([c2 * H2 + p for p in range(H2) for c2 in range(C2)], jnp.int32)
    fw0p = params["fw0"][perm]                                        # (H2*C2, 32)

    slab = jnp.zeros((SLAB_ROWS, SLAB_COLS), jnp.float32)
    slab = slab.at[0:CONTEXT * D, W1_C0:W1_C1].set(w1b)
    slab = slab.at[0:H1 * C1, W2_C0:W2_C1].set(w2b)
    slab = slab.at[0:FC_IN, F0_C0:F0_C1].set(fw0p)
    slab = slab.at[0:SIZES[0], F1_C0:F1_C1].set(params["fw1"])
    slab = slab.at[B1_ROW, 0:H1 * C1].set(jnp.tile(params["b1"], H1))
    slab = slab.at[B2_ROW, 0:H2 * C2].set(jnp.tile(params["b2"], H2))
    slab = slab.at[FB0_ROW, 0:SIZES[0]].set(params["fb0"])
    slab = slab.at[FB1_ROW, 0:SIZES[1]].set(params["fb1"])
    slab = slab.at[FB2_ROW, 0:1].set(params["fb2"])
    slab = slab.at[FW2_ROW, 0:SIZES[1]].set(params["fw2"][:, 0])
    return slab.astype(jnp.bfloat16)


# -------------------------------- wrapper -----------------------------------
@jax.jit
def ngram_conv_forward(state, action, slab):
    """state/action: (seq_len, batch, dim) f32; slab: pack_params(params).
    Returns (batch, seq_len)."""
    s, b, ds = state.shape
    da = action.shape[-1]
    n = s * b
    # Free reshapes only; concat / ngram padding / bf16 casts all happen in-kernel.
    s2d = state.reshape(n, ds)
    a2d = action.reshape(n, da)

    # Toy size: all n rows fit one tile -> single grid step.
    # TODO(synk): at production seq*batch, tile rows (TILE_N >= 512, multiple of 128)
    # and carry a HALF*batch row halo on the state/action BlockSpecs; the row axis is
    # already marked "parallel" so both v7x TensorCores get work.
    out = pl.pallas_call(
        functools.partial(_ngram_conv_kernel, batch=b),
        out_shape=jax.ShapeDtypeStruct((1, n), jnp.float32),
        grid_spec=pltpu.PrefetchScalarGridSpec(
            num_scalar_prefetch=0,
            grid=(1,),
            in_specs=[
                pl.BlockSpec((n, ds), lambda i: (0, 0)),
                pl.BlockSpec((n, da), lambda i: (0, 0)),
                pl.BlockSpec((SLAB_ROWS, SLAB_COLS), lambda i: (0, 0)),
            ],
            out_specs=pl.BlockSpec((1, n), lambda i: (0, 0)),
        ),
        compiler_params=pltpu.CompilerParams(dimension_semantics=("parallel",)),
    )(s2d, a2d, slab)                                                  # (1, n) lane-dense

    return out.reshape(s, b).T                                         # (batch, seq_len)


# --------------------------- pure-JAX reference ------------------------------
def ngram_jax(x, context_size):
    s, b, d = x.shape
    pad = jnp.zeros((1, b, d), x.dtype)
    half = context_size // 2
    shifted_list = []
    for i in range(context_size):
        offset = i - half
        if offset < 0:
            shifted = jnp.concatenate(
                [jnp.tile(pad, (-offset, 1, 1)), x[: s + offset]], axis=0)
        elif offset > 0:
            shifted = jnp.concatenate(
                [x[offset:], jnp.tile(pad, (offset, 1, 1))], axis=0)
        else:
            shifted = x
        shifted_list.append(shifted)
    return jnp.concatenate(shifted_list, axis=-1)


def reference_forward(state, action, params):
    x = jnp.concatenate([state, action], axis=-1)
    ng = ngram_jax(x, CONTEXT)
    s, b, _ = ng.shape
    img = ng.reshape(s * b, 1, CONTEXT, D)                    # NCHW
    dn = ("NCHW", "OIHW", "NCHW")
    y = lax.conv_general_dilated(img, params["w1"], (1, 1), "VALID",
                                 dimension_numbers=dn)
    y = jax.nn.relu(y + params["b1"][None, :, None, None])    # (N, C1, H1, 1)
    y = lax.conv_general_dilated(y, params["w2"], (1, 1), "VALID",
                                 dimension_numbers=dn)
    y = jax.nn.relu(y + params["b2"][None, :, None, None])    # (N, C2, H2, 1)
    flat = y.reshape(s * b, -1)                               # order: c2*H2 + h2
    h = jax.nn.relu(flat @ params["fw0"] + params["fb0"])
    h = jax.nn.relu(h @ params["fw1"] + params["fb1"])
    out = jax.nn.sigmoid(h @ params["fw2"] + params["fb2"])
    return out.reshape(s, b).T


# ----------------------------------- main ------------------------------------
def init_params(key):
    ks = jax.random.split(key, 10)
    norm = lambda k, shp, fan_in: (jax.random.normal(k, shp, jnp.float32)
                                   / jnp.sqrt(jnp.float32(fan_in)))
    return {
        "w1": norm(ks[0], (C1, 1, KH1, D), KH1 * D),
        "b1": norm(ks[1], (C1,), KH1 * D),
        "w2": norm(ks[2], (C2, C1, KH2, 1), KH2 * C1),
        "b2": norm(ks[3], (C2,), KH2 * C1),
        "fw0": norm(ks[4], (FC_IN, SIZES[0]), FC_IN),
        "fb0": norm(ks[5], (SIZES[0],), FC_IN),
        "fw1": norm(ks[6], (SIZES[0], SIZES[1]), SIZES[0]),
        "fb1": norm(ks[7], (SIZES[1],), SIZES[0]),
        "fw2": norm(ks[8], (SIZES[1], 1), SIZES[1]),
        "fb2": norm(ks[9], (1,), SIZES[1]),
    }


if __name__ == "__main__":
    key = jax.random.PRNGKey(0)
    k_state, k_action, k_params = jax.random.split(key, 3)
    state = jax.random.normal(k_state, (SEQ_LEN, BATCH, STATE_DIM), jnp.float32)
    action = jax.random.normal(k_action, (SEQ_LEN, BATCH, ACTION_DIM), jnp.float32)
    params = init_params(k_params)

    # Weight packing runs ONCE, outside the jitted per-step forward (perf review #1).
    slab = jax.block_until_ready(pack_params(params))

    out = jax.block_until_ready(ngram_conv_forward(state, action, slab))
    ref = jax.block_until_ready(reference_forward(state, action, params))

    assert out.shape == (BATCH, SEQ_LEN), out.shape
    # bf16 matmul operands with f32 accumulation -> bf16-appropriate tolerance.
    max_err = float(jnp.abs(out - ref).max())
    assert jnp.allclose(out, ref, atol=2e-2, rtol=2e-2), max_err

    print("KERNEL_OK")
</pallas_src>

<mosaic_0001>
module attributes {stable_mosaic.version = 11 : i64} {
  func.func @_ngram_conv_kernel(%arg0: i32, %arg1: memref<128x8xf32, #tpu.memory_space<vmem>>, %arg2: memref<128x8xf32, #tpu.memory_space<vmem>>, %arg3: memref<88x128xbf16, #tpu.memory_space<vmem>>, %arg4: memref<1x128xf32, #tpu.memory_space<vmem>>) attributes {dimension_semantics = [#tpu.dimension_semantics<parallel>], iteration_bounds = array<i64: 1>, scalar_prefetch = 0 : i64, scratch_operands = 0 : i64, tpu.core_type = #tpu.core_type<tc>, window_params = [{pipeline_mode = #tpu.pipeline_mode<synchronous>, transform_indices = @transform_0, window_bounds = array<i64: 128, 8>}, {pipeline_mode = #tpu.pipeline_mode<synchronous>, transform_indices = @transform_1, window_bounds = array<i64: 128, 8>}, {pipeline_mode = #tpu.pipeline_mode<synchronous>, transform_indices = @transform_2, window_bounds = array<i64: 88, 128>}, {pipeline_mode = #tpu.pipeline_mode<synchronous>, transform_indices = @transform_3, window_bounds = array<i64: 1, 128>}]} {
    %c0 = arith.constant 0 : index
    %c0_0 = arith.constant 0 : index
    %0 = vector.load %arg1[%c0, %c0_0] : memref<128x8xf32, #tpu.memory_space<vmem>>, vector<128x8xf32>
    %c0_1 = arith.constant 0 : index
    %c0_2 = arith.constant 0 : index
    %1 = vector.load %arg2[%c0_1, %c0_2] : memref<128x8xf32, #tpu.memory_space<vmem>>, vector<128x8xf32>
    %2 = tpu.concatenate %0, %1 in 1 : vector<128x8xf32>, vector<128x8xf32> -> vector<128x16xf32>
    %cst = arith.constant 0.000000e+00 : f32
    %3 = vector.broadcast %cst : f32 to vector<16x16xf32>
    %4 = vector.extract_strided_slice %2 {offsets = [0, 0], sizes = [112, 16], strides = [1, 1]} : vector<128x16xf32> to vector<112x16xf32>
    %5 = tpu.concatenate %3, %4 in 0 : vector<16x16xf32>, vector<112x16xf32> -> vector<128x16xf32>
    %cst_3 = arith.constant 0.000000e+00 : f32
    %6 = vector.broadcast %cst_3 : f32 to vector<8x16xf32>
    %7 = vector.extract_strided_slice %2 {offsets = [0, 0], sizes = [120, 16], strides = [1, 1]} : vector<128x16xf32> to vector<120x16xf32>
    %8 = tpu.concatenate %6, %7 in 0 : vector<8x16xf32>, vector<120x16xf32> -> vector<128x16xf32>
    %9 = vector.extract_strided_slice %2 {offsets = [8, 0], sizes = [120, 16], strides = [1, 1]} : vector<128x16xf32> to vector<120x16xf32>
    %cst_4 = arith.constant 0.000000e+00 : f32
    %10 = vector.broadcast %cst_4 : f32 to vector<8x16xf32>
    %11 = tpu.concatenate %9, %10 in 0 : vector<120x16xf32>, vector<8x16xf32> -> vector<128x16xf32>
    %12 = vector.extract_strided_slice %2 {offsets = [16, 0], sizes = [112, 16], strides = [1, 1]} : vector<128x16xf32> to vector<112x16xf32>
    %cst_5 = arith.constant 0.000000e+00 : f32
    %13 = vector.broadcast %cst_5 : f32 to vector<16x16xf32>
    %14 = tpu.concatenate %12, %13 in 0 : vector<112x16xf32>, vector<16x16xf32> -> vector<128x16xf32>
    %15 = tpu.concatenate %5, %8, %2, %11, %14 in 1 : vector<128x16xf32>, vector<128x16xf32>, vector<128x16xf32>, vector<128x16xf32>, vector<128x16xf32> -> vector<128x80xf32>
    %16 = arith.truncf %15 : vector<128x80xf32> to vector<128x80xbf16>
    %c0_6 = arith.constant 0 : index
    %c0_7 = arith.constant 0 : index
    %17 = vector.load %arg3[%c0_6, %c0_7] : memref<88x128xbf16, #tpu.memory_space<vmem>>, vector<80x24xbf16>
    %cst_8 = arith.constant dense<0.000000e+00> : vector<128x24xf32>
    %18 = tpu.matmul %16, %17, %cst_8 {dimension_numbers = #tpu.dot_dimension_numbers<[1], [0], [0], [1], [0, 0, 1, 1], [], []>} : vector<128x80xbf16>, vector<80x24xbf16>, vector<128x24xf32> -> vector<128x24xf32>
    %c80 = arith.constant 80 : index
    %c0_9 = arith.constant 0 : index
    %19 = vector.load %arg3[%c80, %c0_9] : memref<88x128xbf16, #tpu.memory_space<vmem>>, vector<1x24xbf16>
    %20 = arith.extf %19 : vector<1x24xbf16> to vector<1x24xf32>
    %21 = vector.broadcast %20 : vector<1x24xf32> to vector<128x24xf32>
    %22 = arith.addf %18, %21 : vector<128x24xf32>
    %cst_10 = arith.constant 0.000000e+00 : f32
    %23 = vector.broadcast %cst_10 : f32 to vector<128x24xf32>
    %24 = arith.maximumf %22, %23 : vector<128x24xf32>
    %25 = arith.truncf %24 : vector<128x24xf32> to vector<128x24xbf16>
    %c0_11 = arith.constant 0 : index
    %c24 = arith.constant 24 : index
    %26 = vector.load %arg3[%c0_11, %c24] : memref<88x128xbf16, #tpu.memory_space<vmem>>, vector<24x8xbf16>
    %cst_12 = arith.constant dense<0.000000e+00> : vector<128x8xf32>
    %27 = tpu.matmul %25, %26, %cst_12 {dimension_numbers = #tpu.dot_dimension_numbers<[1], [0], [0], [1], [0, 0, 1, 1], [], []>} : vector<128x24xbf16>, vector<24x8xbf16>, vector<128x8xf32> -> vector<128x8xf32>
    %c81 = arith.constant 81 : index
    %c0_13 = arith.constant 0 : index
    %28 = vector.load %arg3[%c81, %c0_13] : memref<88x128xbf16, #tpu.memory_space<vmem>>, vector<1x8xbf16>
    %29 = arith.extf %28 : vector<1x8xbf16> to vector<1x8xf32>
    %30 = vector.broadcast %29 : vector<1x8xf32> to vector<128x8xf32>
    %31 = arith.addf %27, %30 : vector<128x8xf32>
    %cst_14 = arith.constant 0.000000e+00 : f32
    %32 = vector.broadcast %cst_14 : f32 to vector<128x8xf32>
    %33 = arith.maximumf %31, %32 : vector<128x8xf32>
    %34 = arith.truncf %33 : vector<128x8xf32> to vector<128x8xbf16>
    %c0_15 = arith.constant 0 : index
    %c32 = arith.constant 32 : index
    %35 = vector.load %arg3[%c0_15, %c32] : memref<88x128xbf16, #tpu.memory_space<vmem>>, vector<8x32xbf16>
    %cst_16 = arith.constant dense<0.000000e+00> : vector<128x32xf32>
    %36 = tpu.matmul %34, %35, %cst_16 {dimension_numbers = #tpu.dot_dimension_numbers<[1], [0], [0], [1], [0, 0, 1, 1], [], []>} : vector<128x8xbf16>, vector<8x32xbf16>, vector<128x32xf32> -> vector<128x32xf32>
    %c82 = arith.constant 82 : index
    %c0_17 = arith.constant 0 : index
    %37 = vector.load %arg3[%c82, %c0_17] : memref<88x128xbf16, #tpu.memory_space<vmem>>, vector<1x32xbf16>
    %38 = arith.extf %37 : vector<1x32xbf16> to vector<1x32xf32>
    %39 = vector.broadcast %38 : vector<1x32xf32> to vector<128x32xf32>
    %40 = arith.addf %36, %39 : vector<128x32xf32>
    %cst_18 = arith.constant 0.000000e+00 : f32
    %41 = vector.broadcast %cst_18 : f32 to vector<128x32xf32>
    %42 = arith.maximumf %40, %41 : vector<128x32xf32>
    %43 = arith.truncf %42 : vector<128x32xf32> to vector<128x32xbf16>
    %c0_19 = arith.constant 0 : index
    %c64 = arith.constant 64 : index
    %44 = vector.load %arg3[%c0_19, %c64] : memref<88x128xbf16, #tpu.memory_space<vmem>>, vector<32x16xbf16>
    %cst_20 = arith.constant dense<0.000000e+00> : vector<128x16xf32>
    %45 = tpu.matmul %43, %44, %cst_20 {dimension_numbers = #tpu.dot_dimension_numbers<[1], [0], [0], [1], [0, 0, 1, 1], [], []>} : vector<128x32xbf16>, vector<32x16xbf16>, vector<128x16xf32> -> vector<128x16xf32>
    %c83 = arith.constant 83 : index
    %c0_21 = arith.constant 0 : index
    %46 = vector.load %arg3[%c83, %c0_21] : memref<88x128xbf16, #tpu.memory_space<vmem>>, vector<1x16xbf16>
    %47 = arith.extf %46 : vector<1x16xbf16> to vector<1x16xf32>
    %48 = vector.broadcast %47 : vector<1x16xf32> to vector<128x16xf32>
    %49 = arith.addf %45, %48 : vector<128x16xf32>
    %cst_22 = arith.constant 0.000000e+00 : f32
    %50 = vector.broadcast %cst_22 : f32 to vector<128x16xf32>
    %51 = arith.maximumf %49, %50 : vector<128x16xf32>
    %c85 = arith.constant 85 : index
    %c0_23 = arith.constant 0 : index
    %52 = vector.load %arg3[%c85, %c0_23] : memref<88x128xbf16, #tpu.memory_space<vmem>>, vector<1x16xbf16>
    %53 = arith.truncf %51 : vector<128x16xf32> to vector<128x16xbf16>
    %cst_24 = arith.constant dense<0.000000e+00> : vector<1x128xf32>
    %54 = tpu.matmul %52, %53, %cst_24 {dimension_numbers = #tpu.dot_dimension_numbers<[1], [1], [0], [0], [0, 0, 1, 0], [], []>} : vector<1x16xbf16>, vector<128x16xbf16>, vector<1x128xf32> -> vector<1x128xf32>
    %c84 = arith.constant 84 : index
    %c0_25 = arith.constant 0 : index
    %55 = vector.load %arg3[%c84, %c0_25] : memref<88x128xbf16, #tpu.memory_space<vmem>>, vector<1x1xbf16>
    %56 = arith.extf %55 : vector<1x1xbf16> to vector<1x1xf32>
    %57 = vector.broadcast %56 : vector<1x1xf32> to vector<1x128xf32>
    %58 = arith.addf %54, %57 : vector<1x128xf32>
    %59 = arith.negf %58 : vector<1x128xf32>
    %60 = math.exp %59 : vector<1x128xf32>
    %cst_26 = arith.constant 1.000000e+00 : f32
    %61 = vector.broadcast %cst_26 : f32 to vector<1x128xf32>
    %62 = arith.addf %61, %60 : vector<1x128xf32>
    %63 = arith.divf %61, %62 : vector<1x128xf32>
    %c0_27 = arith.constant 0 : index
    %c0_28 = arith.constant 0 : index
    %64 = vector.load %arg4[%c0_27, %c0_28] : memref<1x128xf32, #tpu.memory_space<vmem>>, vector<1x128xf32>
    tpu.vector_store %arg4[%c0_27, %c0_28], %63 {strides = array<i32>} : memref<1x128xf32, #tpu.memory_space<vmem>>, vector<1x128xf32>,
    return
  }
  func.func @transform_0(%arg0: i32) -> (i32, i32) {
    %c0_i32 = arith.constant 0 : i32
    %c0_i32_0 = arith.constant 0 : i32
    %c0_i32_1 = arith.constant 0 : i32
    return %c0_i32, %c0_i32_0 : i32, i32
  }
  func.func @transform_1(%arg0: i32) -> (i32, i32) {
    %c0_i32 = arith.constant 0 : i32
    %c0_i32_0 = arith.constant 0 : i32
    %c0_i32_1 = arith.constant 0 : i32
    return %c0_i32, %c0_i32_0 : i32, i32
  }
  func.func @transform_2(%arg0: i32) -> (i32, i32) {
    %c0_i32 = arith.constant 0 : i32
    %c0_i32_0 = arith.constant 0 : i32
    %c0_i32_1 = arith.constant 0 : i32
    return %c0_i32, %c0_i32_0 : i32, i32
  }
  func.func @transform_3(%arg0: i32) -> (i32, i32) {
    %c0_i32 = arith.constant 0 : i32
    %c0_i32_0 = arith.constant 0 : i32
    %c0_i32_1 = arith.constant 0 : i32
    return %c0_i32, %c0_i32_0 : i32, i32
  }
}

</mosaic_0001>

<bundles_post_ra>
// kernel: ngram_conv_forward.1
= control target key start
LH: loop header
LB: loop body
LE: loop exit
PB: predicated region body
PF: predicated region fallthrough
CT: control target
= control target key end

     0   :  { %s1259_s20 = smov 8   ;;  %vm111_vm0 = vcmask 64512   ;;  %v1260_v16 = vmov 0.0   ;;  %s1261_s4 = smov 16   ;;  %vm334_vm1 = vcmask 130048   ;;  %vm351_vm2 = vcmask 261120   ;;  %s1738_s1 = inlined_call_operand.vmem [shape: f32[128,8], index: 1, kind: input, shape index: {}]   ;;  %s1739_s0 = inlined_call_operand.vmem [shape: f32[128,8], index: 0, kind: input, shape index: {}]   ;;  %s1740_s2 = inlined_call_operand.vmem [shape: bf16[88,128], index: 2, kind: input, shape index: {}]   ;;  %s1741_s3 = inlined_call_operand.vmem [shape: f32[1,128], index: 3, kind: output, shape index: {}]  }
   0x1   :  { %v31_v0 = vld [vmem:[%s1738_s1] sm:$0xff]  ;;  %v32_v1 = vld [vmem:[%s1738_s1 + $0x8] sm:$0xff]  ;;  %v33_v6 = vld [vmem:[%s1738_s1 + $0x10] sm:$0xff]  ;;  %s1262_s11 = smov 64   ;;  %s1263_s12 = smov 48   ;;  %vm368_vm3 = vcmask 392192  }
   0x2   :  { %v35_v2 = vld [vmem:[%s1738_s1 + $0x20] sm:$0xff]  ;;  %v1059_v3 = vpack.i.bf16 %v32_v1, %v31_v0  ;;  %v36_v4 = vld [vmem:[%s1738_s1 + $0x28] sm:$0xff]  ;;  %v34_v7 = vld [vmem:[%s1738_s1 + $0x18] sm:$0xff]  ;;  %s1264_s13 = smov 32   ;;  %vm385_vm4 = vcmask 523264   ;;  %vm453_vm5 = vcmask 654336  }
   0x3   :  { %v1069_v5 = vpack.i.bf16 %v36_v4, %v35_v2  ;;  %v37_v8 = vld [vmem:[%s1738_s1 + $0x30] sm:$0xff]  ;;  %v38_v9 = vld [vmem:[%s1738_s1 + $0x38] sm:$0xff]  ;;  %v1064_v10 = vpack.i.bf16 %v34_v7, %v33_v6  ;;  %v15_v13 = vld [vmem:[%s1739_s0] sm:$0xff]  ;;  %s1265_s22 = smov 104   ;;  %vm593_vm6 = vcmask 1043456   ;;  %vm568_vm7 = vcmask 195584  }
   0x4   :  { %1060 = vrot.lane.b32.xlu0 %v1059_v3, %s1259_s20  ;;  %v1074_v11 = vpack.i.bf16 %v38_v9, %v37_v8  ;;  %v16_v19 = vld [vmem:[%s1739_s0 + $0x8] sm:$0xff]  ;;  %v17_v21 = vld [vmem:[%s1739_s0 + $0x10] sm:$0xff]  ;;  %v18_v22 = vld [vmem:[%s1739_s0 + $0x18] sm:$0xff] }
   0x5   :  { %1070 = vrot.lane.b32.xlu1 %v1069_v5, %s1259_s20  ;;  %v39_v31 = vld [vmem:[%s1738_s1 + $0x40] sm:$0xff]  ;;  %v40_v32 = vld [vmem:[%s1738_s1 + $0x48] sm:$0xff]  ;;  %v41_v40 = vld [vmem:[%s1738_s1 + $0x50] sm:$0xff] }
   0x6   :  { %v1099_v35 = vpack.i.bf16 %v40_v32, %v39_v31  ;;  %v20_v36 = vld [vmem:[%s1739_s0 + $0x28] sm:$0xff]  ;;  %v19_v38 = vld [vmem:[%s1739_s0 + $0x20] sm:$0xff]  ;;  %v42_v41 = vld [vmem:[%s1738_s1 + $0x58] sm:$0xff] }
   0x7   :  { %v1124_v44 = vpack.i.bf16 %v42_v41, %v41_v40  ;;  %v21_v48 = vld [vmem:[%s1739_s0 + $0x30] sm:$0xff]  ;;  %v22_v52 = vld [vmem:[%s1739_s0 + $0x38] sm:$0xff]  ;;  %v43_v53 = vld [vmem:[%s1738_s1 + $0x60] sm:$0xff] }
   0x8   :  { %v44_v54 = vld [vmem:[%s1738_s1 + $0x68] sm:$0xff]  ;;  %v45_v58 = vld [vmem:[%s1738_s1 + $0x70] sm:$0xff]  ;;  %v46_v59 = vld [vmem:[%s1738_s1 + $0x78] sm:$0xff]  ;;  %s1266_s1 = smov 96  }
   0x9   :  { %v1149_v56 = vpack.i.bf16 %v44_v54, %v43_v53  ;;  %v1174_v60 = vpack.i.bf16 %v46_v59, %v45_v58  ;;  %v1046_v61 = vld [vmem:[%s1740_s2 + $0x20] sm:$0xff]  ;;  %v1045_v62 = vld [vmem:[%s1740_s2 + $0x18] sm:$0xff]  ;;  %v1044_v63 = vld [vmem:[%s1740_s2 + $0x10] sm:$0xff] }
   0xa   :  { %481 = vmatpush.bf16.msra.mxu0 %v1046_v61  ;;  %v1043_v0 = vld [vmem:[%s1740_s2 + $0x8] sm:$0xff]  ;;  %v1042_v2 = vld [vmem:[%s1740_s2] sm:$0xff] }
   0xb   :  { %v23_v4 = vld [vmem:[%s1739_s0 + $0x40] sm:$0xff]  ;;  %v24_v5 = vld [vmem:[%s1739_s0 + $0x48] sm:$0xff] }
   0xc   :  { %1065 = vrot.lane.b32.xlu0 %v1064_v10, %s1259_s20 }
   0xd   :  { %1075 = vrot.lane.b32.xlu1 %v1074_v11, %s1259_s20 }
   0xe   :  { %482 = vmatpush.bf16.msra.mxu0 %v1045_v62 }
  0x12   :  { %483 = vmatpush.bf16.msra.mxu0 %v1044_v63 }
  0x16   :  { %484 = vmatpush.bf16.msra.mxu0 %v1043_v0 }
  0x1a   :  { %485 = vmatpush.bf16.msra.mxu0 %v1042_v2 }
  0x76   :  { %v1061_v12 = vpop.permute.xlu0 %1060 }
  0x77   :  { %v1062_v14 = vunpack.i.l.bf16 %v1061_v12  ;;  %v1063_v18 = vunpack.i.h.bf16 %v1061_v12  ;;  %v1071_v33 = vpop.permute.xlu1 %1070 }
  0x78   :  { %v1073_v34 = vunpack.i.h.bf16 %v1071_v33  ;;  %v1072_v37 = vunpack.i.l.bf16 %v1071_v33 }
  0x79   :  { %v1320_v15 = vsel %vm111_vm0, %v15_v13, %v1062_v14  ;;  %v1335_v25 = vsel %vm111_vm0, %v16_v19, %v1063_v18 }
  0x7a   :  { %v1079_v17 = vpack.i.bf16 %v1320_v15, %v1260_v16  ;;  %v1084_v30 = vpack.i.bf16 %v1335_v25, %v1320_v15  ;;  %v1367_v39 = vsel %vm111_vm0, %v20_v36, %v1073_v34  ;;  %v1377_v42 = vsel %vm111_vm0, %v19_v38, %v1072_v37 }
  0x7b   :  { %v1119_v45 = vpack.i.bf16 %v1367_v39, %v1377_v42 }
  0x7c   :  { %1080 = vrot.lane.b32.xlu2 %v1079_v17, %s1261_s4 }
  0x7e   :  { %v1066_v20 = vpop.permute.xlu0 %1065 }
  0x7f   :  { %v1068_v23 = vunpack.i.h.bf16 %v1066_v20  ;;  %v1067_v24 = vunpack.i.l.bf16 %v1066_v20  ;;  %v1076_v43 = vpop.permute.xlu1 %1075 }
  0x80   :  { %v1077_v46 = vunpack.i.l.bf16 %v1076_v43  ;;  %v1078_v50 = vunpack.i.h.bf16 %v1076_v43 }
  0x81   :  { %v1338_v26 = vsel %vm111_vm0, %v17_v21, %v1067_v24  ;;  %v1341_v27 = vsel %vm111_vm0, %v18_v22, %v1068_v23 }
  0x82   :  { %v1094_v28 = vpack.i.bf16 %v1341_v27, %v1338_v26  ;;  %v1089_v29 = vpack.i.bf16 %v1338_v26, %v1335_v25  ;;  %v1114_v47 = vpack.i.bf16 %v1377_v42, %v1341_v27  ;;  %v1390_v49 = vsel %vm111_vm0, %v21_v48, %v1077_v46 }
  0x83   :  { %v1139_v51 = vpack.i.bf16 %v1390_v49, %v1367_v39  ;;  %v1407_v55 = vsel %vm111_vm0, %v22_v52, %v1078_v50 }
  0x84   :  { %1095 = vrot.lane.b32.xlu1 %v1094_v28, %s1262_s11  ;;  %1090 = vrot.lane.b32.xlu0 %v1089_v29, %s1263_s12  ;;  %v1144_v57 = vpack.i.bf16 %v1407_v55, %v1390_v49 }
  0x85   :  { %1085 = vrot.lane.b32.xlu2 %v1084_v30, %s1264_s13 }
  0x8c   :  { %1110 = vrot.lane.b32.xlu1 %v1094_v28, %s1264_s13  ;;  %1105 = vrot.lane.b32.xlu0 %v1089_v29, %s1261_s4 }
  0x8d   :  { %1100 = vrot.lane.b32.xlu2 %v1099_v35, %s1259_s20 }
  0x94   :  { %1125 = vrot.lane.b32.xlu1 %v1124_v44, %s1259_s20  ;;  %1120 = vrot.lane.b32.xlu0 %v1119_v45, %s1262_s11 }
  0x95   :  { %1115 = vrot.lane.b32.xlu2 %v1114_v47, %s1263_s12 }
  0x9c   :  { %1140 = vrot.lane.b32.xlu1 %v1139_v51, %s1263_s12  ;;  %1135 = vrot.lane.b32.xlu0 %v1119_v45, %s1264_s13 }
  0x9d   :  { %1130 = vrot.lane.b32.xlu2 %v1114_v47, %s1261_s4 }
  0xa4   :  { %1155 = vrot.lane.b32.xlu1 %v1139_v51, %s1261_s4  ;;  %1150 = vrot.lane.b32.xlu0 %v1149_v56, %s1259_s20  ;;  %v25_v56 = vld [vmem:[%s1739_s0 + $0x50] sm:$0xff] }
  0xa5   :  { %1145 = vrot.lane.b32.xlu2 %v1144_v57, %s1262_s11 }
  0xad   :  { %1160 = vrot.lane.b32.xlu2 %v1144_v57, %s1264_s13  ;;  %v26_v57 = vld [vmem:[%s1739_s0 + $0x58] sm:$0xff] }
  0xb5   :  { %1175 = vrot.lane.b32.xlu2 %v1174_v60, %s1259_s20 }
  0xd6   :  { %v1081_v1 = vpop.permute.xlu2 %1080 }
  0xd7   :  { %v1083_v14 = vunpack.i.h.bf16 %v1081_v1  ;;  %v1082_v17 = vunpack.i.l.bf16 %v1081_v1 }
  0xd9   :  { %v336_v20 = vsel %vm334_vm1, 0.0, %v1083_v14  ;;  %v335_v21 = vsel %vm334_vm1, 0.0, %v1082_v17 }
  0xdf   :  { %v1086_v3 = vpop.permute.xlu2 %1085 }
  0xe0   :  { %v1088_v18 = vunpack.i.h.bf16 %v1086_v3  ;;  %v1087_v19 = vunpack.i.l.bf16 %v1086_v3 }
  0xe2   :  { %v352_v31 = vsel %vm351_vm2, %v335_v21, %v1087_v19  ;;  %v353_v32 = vsel %vm351_vm2, %v336_v20, %v1088_v18 }
  0xe7   :  { %v1101_v6 = vpop.permute.xlu2 %1100 }
  0xe8   :  { %v1103_v7 = vunpack.i.h.bf16 %v1101_v6  ;;  %v1102_v8 = vunpack.i.l.bf16 %v1101_v6 }
  0xea   :  { %v1444_v9 = vsel %vm111_vm0, %v24_v5, %v1103_v7  ;;  %v1447_v10 = vsel %vm111_vm0, %v23_v4, %v1102_v8 }
  0xeb   :  { %v1164_v11 = vpack.i.bf16 %v1447_v10, %v1407_v55  ;;  %v1169_v12 = vpack.i.bf16 %v1444_v9, %v1447_v10 }
  0xed   :  { %1165 = vrot.lane.b32.xlu0 %v1164_v11, %s1263_s12  ;;  %1170 = vrot.lane.b32.xlu1 %v1169_v12, %s1262_s11 }
  0xef   :  { %v1116_v13 = vpop.permute.xlu2 %1115 }
  0xf0   :  { %v1118_v53 = vunpack.i.h.bf16 %v1116_v13  ;;  %v1117_v54 = vunpack.i.l.bf16 %v1116_v13 }
  0xf5   :  { %1180 = vrot.lane.b32.xlu0 %v1164_v11, %s1261_s4  ;;  %1185 = vrot.lane.b32.xlu1 %v1169_v12, %s1264_s13 }
  0xf6   :  { %v1096_v22 = vpop.permute.xlu1 %1095  ;;  %v1091_v23 = vpop.permute.xlu0 %1090 }
  0xf7   :  { %v1098_v24 = vunpack.i.h.bf16 %v1096_v22  ;;  %v1097_v28 = vunpack.i.l.bf16 %v1096_v22  ;;  %v1093_v29 = vunpack.i.h.bf16 %v1091_v23  ;;  %v1092_v30 = vunpack.i.l.bf16 %v1091_v23  ;;  %v1131_v37 = vpop.permute.xlu2 %1130 }
  0xf8   :  { %v1133_v7 = vunpack.i.h.bf16 %v1131_v37  ;;  %v1132_v8 = vunpack.i.l.bf16 %v1131_v37 }
  0xf9   :  { %v369_v33 = vsel %vm368_vm3, %v352_v31, %v1092_v30  ;;  %v370_v34 = vsel %vm368_vm3, %v353_v32, %v1093_v29 }
  0xfa   :  { %v386_v35 = vsel %vm385_vm4, %v369_v33, %v1097_v28  ;;  %v387_v36 = vsel %vm385_vm4, %v370_v34, %v1098_v24  ;;  %v340_v18 = vsel %vm334_vm1, %v1341_v27, %v1133_v7  ;;  %v339_v19 = vsel %vm334_vm1, %v1338_v26, %v1132_v8  ;;  %v27_v27 = vld [vmem:[%s1739_s0 + $0x60] sm:$0xff]  ;;  %v28_v26 = vld [vmem:[%s1739_s0 + $0x68] sm:$0xff] }
  0xfb   :  { %v402_v38 = vpack.c.bf16 %v387_v36, %v386_v35 }
  0xfd   :  { %996 = vmatmul.msk.bf16.vlgmr.msra.gmra.mxu0 %vm453_vm5, %v402_v38 }
  0xfe   :  { %v1111_v40 = vpop.permute.xlu1 %1110  ;;  %v1106_v41 = vpop.permute.xlu0 %1105 }
  0xff   :  { %v1108_v43 = vunpack.i.h.bf16 %v1106_v41  ;;  %v1107_v44 = vunpack.i.l.bf16 %v1106_v41  ;;  %v1113_v45 = vunpack.i.h.bf16 %v1111_v40  ;;  %v1112_v46 = vunpack.i.l.bf16 %v1111_v40  ;;  %v1146_v50 = vpop.permute.xlu2 %1145 }
 0x100   :  { %v1148_v24 = vunpack.i.h.bf16 %v1146_v50  ;;  %v1147_v28 = vunpack.i.l.bf16 %v1146_v50 }
 0x101   :  { %v338_v47 = vsel %vm334_vm1, %v1335_v25, %v1108_v43  ;;  %v337_v48 = vsel %vm334_vm1, %v1320_v15, %v1107_v44  ;;  %v30_v44 = vld [vmem:[%s1739_s0 + $0x78] sm:$0xff] }
 0x102   :  { %v355_v51 = vsel %vm351_vm2, %v338_v47, %v1113_v45  ;;  %v354_v52 = vsel %vm351_vm2, %v337_v48, %v1112_v46  ;;  %v29_v47 = vld [vmem:[%s1739_s0 + $0x70] sm:$0xff] }
 0x103   :  { %v371_v62 = vsel %vm368_vm3, %v354_v52, %v1117_v54  ;;  %v372_v63 = vsel %vm368_vm3, %v355_v51, %v1118_v53  ;;  %v553_v54 = vld [vmem:[%s1740_s2 + $0x8] sm:$0xf] }
 0x106   :  { %v1126_v58 = vpop.permute.xlu1 %1125  ;;  %v1121_v25 = vpop.permute.xlu0 %1120 }
 0x107   :  { %v1128_v59 = vunpack.i.h.bf16 %v1126_v58  ;;  %v1127_v60 = vunpack.i.l.bf16 %v1126_v58  ;;  %v1123_v15 = vunpack.i.h.bf16 %v1121_v25  ;;  %v1122_v61 = vunpack.i.l.bf16 %v1121_v25  ;;  %v1496_v11 = vpop.permute.xlu2 %1160  ;;  %v1047_v58 = vld [vmem:[%s1740_s2] sm:$0xff] }
 0x109   :  { %v1481_v0 = vsel %vm111_vm0, %v26_v57, %v1128_v59  ;;  %v1484_v1 = vsel %vm111_vm0, %v25_v56, %v1127_v60  ;;  %v388_v2 = vsel %vm385_vm4, %v371_v62, %v1122_v61  ;;  %v389_v3 = vsel %vm385_vm4, %v372_v63, %v1123_v15 }
 0x10a   :  { %v1189_v4 = vpack.i.bf16 %v1484_v1, %v1444_v9  ;;  %v1194_v5 = vpack.i.bf16 %v1481_v0, %v1484_v1  ;;  %v403_v6 = vpack.c.bf16 %v389_v3, %v388_v2  ;;  %v560_v56 = vunpack.c.l.b16 %v553_v54 }
 0x10b   :  { %v1163_v15 = vunpack.i.h.bf16 %v1496_v11  ;;  %v1162_v61 = vunpack.i.l.bf16 %v1496_v11 }
 0x10c   :  { %1190 = vrot.lane.b32.xlu2 %v1189_v4, %s1263_s12  ;;  %1200 = vrot.lane.b32.xlu1 %v1189_v4, %s1261_s4  ;;  %v562_v57 = vpack.c.b16 %v560_v56, %v560_v56 }
 0x10d   :  { %1195 = vrot.lane.b32.xlu0 %v1194_v5, %s1262_s11  ;;  %997 = vmatmul.msk.bf16.gmra.mxu0 %vm453_vm5, %v403_v6 }
 0x10e   :  { %v1141_v12 = vpop.permute.xlu1 %1140  ;;  %v1136_v13 = vpop.permute.xlu0 %1135 }
 0x10f   :  { %v1138_v14 = vunpack.i.h.bf16 %v1136_v13  ;;  %v1137_v17 = vunpack.i.l.bf16 %v1136_v13  ;;  %v1143_v20 = vunpack.i.h.bf16 %v1141_v12  ;;  %v1142_v21 = vunpack.i.l.bf16 %v1141_v12  ;;  %v1176_v34 = vpop.permute.xlu2 %1175 }
 0x110   :  { %v1178_v40 = vunpack.i.h.bf16 %v1176_v34  ;;  %v1177_v45 = vunpack.i.l.bf16 %v1176_v34 }
 0x111   :  { %v356_v22 = vsel %vm351_vm2, %v339_v19, %v1137_v17  ;;  %v357_v23 = vsel %vm351_vm2, %v340_v18, %v1138_v14 }
 0x112   :  { %v373_v29 = vsel %vm368_vm3, %v356_v22, %v1142_v21  ;;  %v374_v30 = vsel %vm368_vm3, %v357_v23, %v1143_v20  ;;  %v127_v48 = vsel %vm111_vm0, %v30_v44, %v1178_v40  ;;  %v126_v50 = vsel %vm111_vm0, %v29_v47, %v1177_v45 }
 0x113   :  { %v390_v35 = vsel %vm385_vm4, %v373_v29, %v1147_v28  ;;  %v391_v36 = vsel %vm385_vm4, %v374_v30, %v1148_v24  ;;  %v1234_v51 = vpack.i.bf16 %v127_v48, %v126_v50  ;;  %v1249_v53 = vpack.i.bf16 0.0, %v127_v48 }
 0x114   :  { %1205 = vrot.lane.b32.xlu2 %v1194_v5, %s1264_s13  ;;  %v404_v46 = vpack.c.bf16 %v391_v36, %v390_v35 }
 0x116   :  { %v1151_v31 = vpop.permute.xlu0 %1150  ;;  %v1156_v25 = vpop.permute.xlu1 %1155 }
 0x117   :  { %v1153_v32 = vunpack.i.h.bf16 %v1151_v31  ;;  %v1152_v33 = vunpack.i.l.bf16 %v1151_v31  ;;  %v1158_v59 = vunpack.i.h.bf16 %v1156_v25  ;;  %v1157_v60 = vunpack.i.l.bf16 %v1156_v25 }
 0x119   :  { %v1516_v37 = vsel %vm111_vm0, %v28_v26, %v1153_v32  ;;  %v1519_v38 = vsel %vm111_vm0, %v27_v27, %v1152_v33  ;;  %v342_v62 = vsel %vm334_vm1, %v1367_v39, %v1158_v59  ;;  %v341_v63 = vsel %vm334_vm1, %v1377_v42, %v1157_v60 }
 0x11a   :  { %v1219_v41 = vpack.i.bf16 %v1519_v38, %v1481_v0  ;;  %v1214_v43 = vpack.i.bf16 %v1516_v37, %v1519_v38  ;;  %v1229_v52 = vpack.i.bf16 %v126_v50, %v1516_v37  ;;  %v359_v8 = vsel %vm351_vm2, %v342_v62, %v1163_v15 }
 0x11c   :  { %1220 = vrot.lane.b32.xlu2 %v1219_v41, %s1261_s4  ;;  %1215 = vrot.lane.b32.xlu1 %v1214_v43, %s1262_s11 }
 0x11d   :  { %1210 = vrot.lane.b32.xlu0 %v1219_v41, %s1263_s12  ;;  %998 = vmatmul.msk.bf16.gmra.mxu0 %vm453_vm5, %v404_v46 }
 0x124   :  { %1235 = vrot.lane.b32.xlu2 %v1234_v51, %s1262_s11  ;;  %1230 = vrot.lane.b32.xlu1 %v1229_v52, %s1263_s12 }
 0x125   :  { %1225 = vrot.lane.b32.xlu0 %v1214_v43, %s1264_s13 }
 0x12c   :  { %1250 = vrot.lane.b32.xlu2 %v1249_v53, %s1263_s12  ;;  %1245 = vrot.lane.b32.xlu1 %v1234_v51, %s1264_s13 }
 0x12d   :  { %1240 = vrot.lane.b32.xlu0 %v1229_v52, %s1261_s4 }
 0x134   :  { %565 = vrot.lane.b32.xlu1 %v562_v57, %s1265_s22  ;;  %563 = vrot.lane.b32.xlu2 %v1047_v58, %s1265_s22 }
 0x135   :  { %317 = vrot.lane.b32.xlu0 %v1260_v16, %s1262_s11  ;;  %v358_v16 = vsel %vm351_vm2, %v341_v63, %v1162_v61 }
 0x15f   :  { %v1166_v2 = vpop.permute.xlu0 %1165  ;;  %v1171_v3 = vpop.permute.xlu1 %1170 }
 0x160   :  { %v1168_v4 = vunpack.i.h.bf16 %v1166_v2  ;;  %v1167_v5 = vunpack.i.l.bf16 %v1166_v2  ;;  %v1173_v6 = vunpack.i.h.bf16 %v1171_v3  ;;  %v1172_v7 = vunpack.i.l.bf16 %v1171_v3 }
 0x162   :  { %v376_v12 = vsel %vm368_vm3, %v359_v8, %v1168_v4  ;;  %v375_v11 = vsel %vm368_vm3, %v358_v16, %v1167_v5 }
 0x163   :  { %v392_v13 = vsel %vm385_vm4, %v375_v11, %v1172_v7  ;;  %v393_v39 = vsel %vm385_vm4, %v376_v12, %v1173_v6 }
 0x164   :  { %v405_v14 = vpack.c.bf16 %v393_v39, %v392_v13  ;;  %v1596_v39 = vld [vmem:[%s1740_s2 + $0x28] sm:$0x1] }
 0x166   :  { %999 = vmatmul.msk.bf16.gmra.mxu0 %vm453_vm5, %v405_v14  ;;  %v1191_v20 = vpop.permute.xlu2 %1190 }
 0x167   :  { %v1181_v42 = vpop.permute.xlu0 %1180  ;;  %v1186_v19 = vpop.permute.xlu1 %1185  ;;  %v1193_v30 = vunpack.i.h.bf16 %v1191_v20  ;;  %v1192_v27 = vunpack.i.l.bf16 %v1191_v20 }
 0x168   :  { %v1183_v17 = vunpack.i.h.bf16 %v1181_v42  ;;  %v1182_v18 = vunpack.i.l.bf16 %v1181_v42  ;;  %v1188_v21 = vunpack.i.h.bf16 %v1186_v19  ;;  %v1187_v22 = vunpack.i.l.bf16 %v1186_v19  ;;  %v670_v19 = vld [vmem:[%s1740_s2] sm:$0xf] }
 0x169   :  { %v675_v20 = vunpack.c.l.b16 %v670_v19 }
 0x16a   :  { %v344_v23 = vsel %vm334_vm1, %v1407_v55, %v1183_v17  ;;  %v343_v24 = vsel %vm334_vm1, %v1390_v49, %v1182_v18  ;;  %v421_v17 = vunpack.c.l.bf16 %v1596_v39 }
 0x16b   :  { %v360_v28 = vsel %vm351_vm2, %v343_v24, %v1187_v22  ;;  %v361_v29 = vsel %vm351_vm2, %v344_v23, %v1188_v21  ;;  %v676_v24 = vpack.c.b16 %v675_v20, %v675_v20 }
 0x16c   :  { %v377_v33 = vsel %vm368_vm3, %v360_v28, %v1192_v27  ;;  %v378_v34 = vsel %vm368_vm3, %v361_v29, %v1193_v30  ;;  %v1608_v28 = vperm.slane %v421_v17, 0 }
 0x16d   :  { %677 = vrot.lane.b32.xlu0 %v676_v24, %s1266_s1 }
 0x16e   :  { %v1206_v36 = vpop.permute.xlu2 %1205 }
 0x16f   :  { %v1208_v48 = vunpack.i.h.bf16 %v1206_v36  ;;  %v1207_v50 = vunpack.i.l.bf16 %v1206_v36 }
 0x176   :  { %v1221_v44 = vpop.permute.xlu2 %1220 }
 0x177   :  { %v1223_v61 = vunpack.i.h.bf16 %v1221_v44  ;;  %v1222_v62 = vunpack.i.l.bf16 %v1221_v44 }
 0x179   :  { %v348_v6 = vsel %vm334_vm1, %v1481_v0, %v1223_v61  ;;  %v347_v7 = vsel %vm334_vm1, %v1484_v1, %v1222_v62 }
 0x17a   :  { %v487_v54 = vpop.f32.mrf.mxu0 }
 0x17e   :  { %v1201_v49 = vpop.permute.xlu1 %1200  ;;  %v1236_v2 = vpop.permute.xlu2 %1235 }
 0x17f   :  { %v1196_v26 = vpop.permute.xlu0 %1195  ;;  %v1203_v41 = vunpack.i.h.bf16 %v1201_v49  ;;  %v1202_v43 = vunpack.i.l.bf16 %v1201_v49  ;;  %v1238_v1 = vunpack.i.h.bf16 %v1236_v2  ;;  %v1237_v18 = vunpack.i.l.bf16 %v1236_v2 }
 0x180   :  { %v1198_v31 = vunpack.i.h.bf16 %v1196_v26  ;;  %v1197_v32 = vunpack.i.l.bf16 %v1196_v26 }
 0x181   :  { %v346_v45 = vsel %vm334_vm1, %v1444_v9, %v1203_v41  ;;  %v345_v46 = vsel %vm334_vm1, %v1447_v10, %v1202_v43 }
 0x182   :  { %v394_v35 = vsel %vm385_vm4, %v377_v33, %v1197_v32  ;;  %v395_v55 = vsel %vm385_vm4, %v378_v34, %v1198_v31  ;;  %v362_v58 = vsel %vm351_vm2, %v345_v46, %v1207_v50  ;;  %v363_v25 = vsel %vm351_vm2, %v346_v45, %v1208_v48  ;;  %v489_v16 = vpop.f32.mrf.mxu0 }
 0x183   :  { %v406_v40 = vpack.c.bf16 %v395_v55, %v394_v35  ;;  %v490_v26 = vadd.f32 %v489_v16, %v1608_v28  ;;  %v488_v34 = vadd.f32 %v487_v54, %v1608_v28 }
 0x185   :  { %1000 = vmatmul.msk.bf16.gmra.mxu0 %vm453_vm5, %v406_v40  ;;  %v528_v55 = vmax.f32 %v490_v26, 0.0  ;;  %v527_v44 = vmax.f32 %v488_v34, 0.0 }
 0x186   :  { %v1251_v21 = vpop.permute.xlu2 %1250 }
 0x187   :  { %v543_v45 = vpack.c.bf16 %v528_v55, %v527_v44  ;;  %v1253_v48 = vunpack.i.h.bf16 %v1251_v21  ;;  %v1252_v50 = vunpack.i.l.bf16 %v1251_v21  ;;  %v1646_v55 = vperm.slane %v421_v17, 1 }
 0x18a   :  { %v492_v30 = vpop.f32.mrf.mxu0 }
 0x18e   :  { %v1216_v47 = vpop.permute.xlu1 %1215  ;;  %v564_v49 = vpop.permute.xlu2 %563 }
 0x18f   :  { %v1218_v51 = vunpack.i.h.bf16 %v1216_v47  ;;  %v1217_v52 = vunpack.i.l.bf16 %v1216_v47  ;;  %v1211_v53 = vpop.permute.xlu0 %1210 }
 0x190   :  { %v1213_v56 = vunpack.i.h.bf16 %v1211_v53  ;;  %v1212_v57 = vunpack.i.l.bf16 %v1211_v53 }
 0x192   :  { %v380_v59 = vsel %vm368_vm3, %v363_v25, %v1213_v56  ;;  %v379_v9 = vsel %vm368_vm3, %v362_v58, %v1212_v57  ;;  %v493_v58 = vadd.f32 %v492_v30, %v1608_v28 }
 0x193   :  { %v396_v60 = vsel %vm385_vm4, %v379_v9, %v1217_v52  ;;  %v397_v10 = vsel %vm385_vm4, %v380_v59, %v1218_v51  ;;  %v494_v51 = vpop.f32.mrf.mxu0 }
 0x194   :  { %v407_v15 = vpack.c.bf16 %v397_v10, %v396_v60  ;;  %v495_v57 = vadd.f32 %v494_v51, %v1608_v28  ;;  %v529_v9 = vmax.f32 %v493_v58, 0.0 }
 0x196   :  { %1001 = vmatmul.msk.bf16.gmra.mxu0 %vm453_vm5, %v407_v15  ;;  %v1231_v63 = vpop.permute.xlu1 %1230  ;;  %v530_v59 = vmax.f32 %v495_v57, 0.0 }
 0x197   :  { %v1226_v3 = vpop.permute.xlu0 %1225  ;;  %v1233_v8 = vunpack.i.h.bf16 %v1231_v63  ;;  %v1232_v12 = vunpack.i.l.bf16 %v1231_v63 }
 0x198   :  { %v1228_v4 = vunpack.i.h.bf16 %v1226_v3  ;;  %v1227_v5 = vunpack.i.l.bf16 %v1226_v3  ;;  %v544_v60 = vpack.c.bf16 %v530_v59, %v529_v9 }
 0x19a   :  { %v365_v11 = vsel %vm351_vm2, %v348_v6, %v1228_v4  ;;  %v364_v13 = vsel %vm351_vm2, %v347_v7, %v1227_v5 }
 0x19b   :  { %v381_v42 = vsel %vm368_vm3, %v364_v13, %v1232_v12  ;;  %v382_v0 = vsel %vm368_vm3, %v365_v11, %v1233_v8  ;;  %v497_v25 = vpop.f32.mrf.mxu0 }
 0x19c   :  { %v398_v22 = vsel %vm385_vm4, %v381_v42, %v1237_v18  ;;  %v399_v23 = vsel %vm385_vm4, %v382_v0, %v1238_v1  ;;  %v498_v61 = vadd.f32 %v497_v25, %v1608_v28 }
 0x19d   :  { %v408_v27 = vpack.c.bf16 %v399_v23, %v398_v22 }
 0x19e   :  { %v1246_v14 = vpop.permute.xlu1 %1245  ;;  %v531_v63 = vmax.f32 %v498_v61, 0.0 }
 0x19f   :  { %v1241_v29 = vpop.permute.xlu0 %1240  ;;  %v1248_v36 = vunpack.i.h.bf16 %v1246_v14  ;;  %v1247_v40 = vunpack.i.l.bf16 %v1246_v14 }
 0x1a0   :  { %v1243_v31 = vunpack.i.h.bf16 %v1241_v29  ;;  %v1242_v32 = vunpack.i.l.bf16 %v1241_v29 }
 0x1a2   :  { %v350_v41 = vsel %vm334_vm1, %v1516_v37, %v1243_v31  ;;  %v349_v43 = vsel %vm334_vm1, %v1519_v38, %v1242_v32 }
 0x1a3   :  { %v366_v46 = vsel %vm351_vm2, %v349_v43, %v1247_v40  ;;  %v367_v47 = vsel %vm351_vm2, %v350_v41, %v1248_v36  ;;  %v499_v10 = vpop.f32.mrf.mxu0  ;;  %v1049_v36 = vld [vmem:[%s1740_s2 + $0x8] sm:$0xff] }
 0x1a4   :  { %v383_v53 = vsel %vm368_vm3, %v366_v46, %v1252_v50  ;;  %v384_v37 = vsel %vm368_vm3, %v367_v47, %v1253_v48  ;;  %v500_v15 = vadd.f32 %v499_v10, %v1608_v28  ;;  %796 = vrot.lane.b32.xlu1 %v1049_v36, %s1262_s11 }
 0x1a6   :  { %1002 = vmatmul.msk.bf16.gmra.mxu0 %vm453_vm5, %v408_v27  ;;  %v566_v33 = vpop.permute.xlu1 %565  ;;  %v532_v62 = vmax.f32 %v500_v15, 0.0 }
 0x1a7   :  { %v595_v35 = vsel %vm593_vm6, %v566_v33, 0  ;;  %v318_v52 = vpop.permute.xlu0 %317 }
 0x1a8   :  { %603 = vmatpush.bf16.msra.mxu1 %v595_v35  ;;  %v400_v38 = vsel %vm385_vm4, %v383_v53, %v318_v52  ;;  %v401_v54 = vsel %vm385_vm4, %v384_v37, %v318_v52  ;;  %v545_v2 = vpack.c.bf16 %v532_v62, %v531_v63 }
 0x1a9   :  { %v409_v56 = vpack.c.bf16 %v401_v54, %v400_v38 }
 0x1ac   :  { %604 = vmatpush.bf16.msra.mxu1 %v564_v49 }
 0x1af   :  { %1008 = vmatmul.msk.bf16.vlgmr.msra.gmra.mxu1 %vm568_vm7, %v543_v45 }
 0x1b6   :  { %1003 = vmatmul.msk.bf16.gmra.mxu0 %vm453_vm5, %v409_v56 }
 0x1bf   :  { %1009 = vmatmul.msk.bf16.gmra.mxu1 %vm568_vm7, %v544_v60 }
 0x1cf   :  { %1010 = vmatmul.msk.bf16.gmra.mxu1 %vm568_vm7, %v545_v2 }
 0x1df   :  { %v678_v19 = vpop.permute.xlu0 %677 }
 0x1e0   :  { %v704_v20 = vsel %vm593_vm6, %v678_v19, 0 }
 0x1e1   :  { %713 = vmatpush.bf16.msra.mxu2 %v704_v20 }
 0x1e3   :  { %v502_v3 = vpop.f32.mrf.mxu0 }
 0x1e4   :  { %v503_v4 = vadd.f32 %v502_v3, %v1608_v28 }
 0x1e6   :  { %v533_v7 = vmax.f32 %v503_v4, 0.0 }
 0x1eb   :  { %v504_v5 = vpop.f32.mrf.mxu0 }
 0x1ec   :  { %v505_v6 = vadd.f32 %v504_v5, %v1608_v28 }
 0x1ee   :  { %v534_v16 = vmax.f32 %v505_v6, 0.0 }
 0x1f0   :  { %v546_v8 = vpack.c.bf16 %v534_v16, %v533_v7 }
 0x1f2   :  { %1011 = vmatmul.msk.bf16.gmra.mxu1 %vm568_vm7, %v546_v8 }
 0x202   :  { %v507_v12 = vpop.f32.mrf.mxu0 }
 0x203   :  { %v508_v11 = vadd.f32 %v507_v12, %v1608_v28 }
 0x205   :  { %v535_v42 = vmax.f32 %v508_v11, 0.0 }
 0x20a   :  { %v509_v13 = vpop.f32.mrf.mxu0 }
 0x20b   :  { %v510_v14 = vadd.f32 %v509_v13, %v1608_v28 }
 0x20d   :  { %v536_v0 = vmax.f32 %v510_v14, 0.0 }
 0x20f   :  { %v547_v1 = vpack.c.bf16 %v536_v0, %v535_v42 }
 0x211   :  { %1012 = vmatmul.msk.bf16.gmra.mxu1 %vm568_vm7, %v547_v1 }
 0x213   :  { %v512_v18 = vpop.f32.mrf.mxu0 }
 0x214   :  { %v513_v21 = vadd.f32 %v512_v18, %v1608_v28 }
 0x216   :  { %v537_v24 = vmax.f32 %v513_v21, 0.0  ;;  %v797_v0 = vpop.permute.xlu1 %796 }
 0x217   :  { %830 = vmatpush.bf16.msra.mxu3 %v797_v0 }
 0x21b   :  { %v514_v22 = vpop.f32.mrf.mxu0 }
 0x21c   :  { %v515_v23 = vadd.f32 %v514_v22, %v1608_v28 }
 0x21e   :  { %v538_v29 = vmax.f32 %v515_v23, 0.0 }
 0x220   :  { %v548_v30 = vpack.c.bf16 %v538_v29, %v537_v24 }
 0x222   :  { %1013 = vmatmul.msk.bf16.gmra.mxu1 %vm568_vm7, %v548_v30 }
 0x223   :  { %v517_v27 = vpop.f32.mrf.mxu0 }
 0x224   :  { %v518_v26 = vadd.f32 %v517_v27, %v1608_v28 }
 0x226   :  { %v539_v34 = vmax.f32 %v518_v26, 0.0 }
 0x22b   :  { %v519_v31 = vpop.f32.mrf.mxu0 }
 0x22c   :  { %v520_v32 = vadd.f32 %v519_v31, %v1608_v28  ;;  %v606_v33 = vpop.f32.mrf.mxu1 }
 0x22d   :  { %v607_v49 = vadd.f32 %v606_v33, %v1646_v55 }
 0x22e   :  { %v540_v35 = vmax.f32 %v520_v32, 0.0  ;;  %v1683_v32 = vld [vmem:[%s1740_s2 + $0x28] sm:$0x2] }
 0x22f   :  { %v646_v45 = vmax.f32 %v607_v49, 0.0 }
 0x230   :  { %v549_v40 = vpack.c.bf16 %v540_v35, %v539_v34  ;;  %v672_v34 = vunpack.c.l.bf16 %v1683_v32 }
 0x232   :  { %1014 = vmatmul.msk.bf16.gmra.mxu1 %vm568_vm7, %v549_v40  ;;  %v1689_v40 = vperm.slane %v672_v34, 2 }
 0x233   :  { %v522_v41 = vpop.f32.mrf.mxu0 }
 0x234   :  { %v608_v43 = vpop.f32.mrf.mxu1  ;;  %v523_v17 = vadd.f32 %v522_v41, %v1608_v28 }
 0x235   :  { %v609_v44 = vadd.f32 %v608_v43, %v1646_v55 }
 0x236   :  { %v541_v51 = vmax.f32 %v523_v17, 0.0 }
 0x237   :  { %v647_v46 = vmax.f32 %v609_v44, 0.0 }
 0x239   :  { %v662_v39 = vpack.c.bf16 %v647_v46, %v646_v45 }
 0x23b   :  { %v524_v47 = vpop.f32.mrf.mxu0  ;;  %1016 = vmatmul.msk.bf16.vlgmr.msra.gmra.mxu2 %vm111_vm0, %v662_v39 }
 0x23c   :  { %v525_v48 = vadd.f32 %v524_v47, %v1608_v28  ;;  %v611_v50 = vpop.f32.mrf.mxu1  ;;  %v1048_v28 = vld [vmem:[%s1740_s2] sm:$0xff] }
 0x23d   :  { %v612_v37 = vadd.f32 %v611_v50, %v1646_v55  ;;  %794 = vrot.lane.b32.xlu2 %v1048_v28, %s1262_s11 }
 0x23e   :  { %v542_v52 = vmax.f32 %v525_v48, 0.0 }
 0x23f   :  { %v648_v56 = vmax.f32 %v612_v37, 0.0 }
 0x240   :  { %v550_v53 = vpack.c.bf16 %v542_v52, %v541_v51 }
 0x242   :  { %1015 = vmatmul.msk.bf16.gmra.mxu1 %vm568_vm7, %v550_v53 }
 0x244   :  { %v613_v38 = vpop.f32.mrf.mxu1 }
 0x245   :  { %v614_v54 = vadd.f32 %v613_v38, %v1646_v55 }
 0x247   :  { %v649_v57 = vmax.f32 %v614_v54, 0.0 }
 0x249   :  { %v663_v58 = vpack.c.bf16 %v649_v57, %v648_v56 }
 0x24b   :  { %1017 = vmatmul.msk.bf16.gmra.mxu2 %vm111_vm0, %v663_v58 }
 0x24c   :  { %v616_v25 = vpop.f32.mrf.mxu1 }
 0x24d   :  { %v617_v59 = vadd.f32 %v616_v25, %v1646_v55 }
 0x24f   :  { %v650_v10 = vmax.f32 %v617_v59, 0.0 }
 0x254   :  { %v618_v9 = vpop.f32.mrf.mxu1 }
 0x255   :  { %v619_v60 = vadd.f32 %v618_v9, %v1646_v55 }
 0x257   :  { %v651_v15 = vmax.f32 %v619_v60, 0.0 }
 0x259   :  { %v664_v61 = vpack.c.bf16 %v651_v15, %v650_v10 }
 0x25b   :  { %1018 = vmatmul.msk.bf16.gmra.mxu2 %vm111_vm0, %v664_v61 }
 0x26f   :  { %v621_v62 = vpop.f32.mrf.mxu1 }
 0x270   :  { %v622_v63 = vadd.f32 %v621_v62, %v1646_v55 }
 0x272   :  { %v652_v4 = vmax.f32 %v622_v63, 0.0 }
 0x277   :  { %v623_v2 = vpop.f32.mrf.mxu1 }
 0x278   :  { %v624_v3 = vadd.f32 %v623_v2, %v1646_v55 }
 0x27a   :  { %v653_v5 = vmax.f32 %v624_v3, 0.0 }
 0x27c   :  { %v665_v6 = vpack.c.bf16 %v653_v5, %v652_v4 }
 0x27e   :  { %1019 = vmatmul.msk.bf16.gmra.mxu2 %vm111_vm0, %v665_v6 }
 0x28e   :  { %v626_v7 = vpop.f32.mrf.mxu1 }
 0x28f   :  { %v627_v16 = vadd.f32 %v626_v7, %v1646_v55 }
 0x291   :  { %v654_v11 = vmax.f32 %v627_v16, 0.0 }
 0x296   :  { %v628_v8 = vpop.f32.mrf.mxu1 }
 0x297   :  { %v629_v12 = vadd.f32 %v628_v8, %v1646_v55  ;;  %v795_v22 = vpop.permute.xlu2 %794 }
 0x298   :  { %831 = vmatpush.bf16.msra.mxu3 %v795_v22 }
 0x299   :  { %v655_v13 = vmax.f32 %v629_v12, 0.0 }
 0x29b   :  { %v666_v14 = vpack.c.bf16 %v655_v13, %v654_v11 }
 0x29d   :  { %1020 = vmatmul.msk.bf16.gmra.mxu2 %vm111_vm0, %v666_v14 }
 0x29f   :  { %v631_v42 = vpop.f32.mrf.mxu1 }
 0x2a0   :  { %v632_v1 = vadd.f32 %v631_v42, %v1646_v55 }
 0x2a2   :  { %v656_v20 = vmax.f32 %v632_v1, 0.0 }
 0x2a7   :  { %v633_v18 = vpop.f32.mrf.mxu1 }
 0x2a8   :  { %v634_v19 = vadd.f32 %v633_v18, %v1646_v55 }
 0x2aa   :  { %v657_v21 = vmax.f32 %v634_v19, 0.0 }
 0x2ac   :  { %v667_v23 = vpack.c.bf16 %v657_v21, %v656_v20 }
 0x2ae   :  { %1021 = vmatmul.msk.bf16.gmra.mxu2 %vm111_vm0, %v667_v23 }
 0x2af   :  { %v636_v24 = vpop.f32.mrf.mxu1 }
 0x2b0   :  { %v637_v29 = vadd.f32 %v636_v24, %v1646_v55 }
 0x2b2   :  { %v658_v26 = vmax.f32 %v637_v29, 0.0 }
 0x2b7   :  { %v638_v30 = vpop.f32.mrf.mxu1 }
 0x2b8   :  { %v639_v27 = vadd.f32 %v638_v30, %v1646_v55 }
 0x2ba   :  { %v659_v31 = vmax.f32 %v639_v27, 0.0 }
 0x2bc   :  { %v668_v33 = vpack.c.bf16 %v659_v31, %v658_v26  ;;  %v783_v26 = vperm.slane %v672_v34, 3 }
 0x2be   :  { %1022 = vmatmul.msk.bf16.gmra.mxu2 %vm111_vm0, %v668_v33  ;;  %v715_v35 = vpop.f32.mrf.mxu2 }
 0x2bf   :  { %v641_v36 = vpop.f32.mrf.mxu1  ;;  %v716_v49 = vadd.f32 %v715_v35, %v1689_v40 }
 0x2c0   :  { %v642_v41 = vadd.f32 %v641_v36, %v1646_v55 }
 0x2c1   :  { %v755_v39 = vmax.f32 %v716_v49, 0.0 }
 0x2c2   :  { %v660_v47 = vmax.f32 %v642_v41, 0.0 }
 0x2c6   :  { %v717_v43 = vpop.f32.mrf.mxu2 }
 0x2c7   :  { %v643_v44 = vpop.f32.mrf.mxu1  ;;  %v718_v45 = vadd.f32 %v717_v43, %v1689_v40 }
 0x2c8   :  { %v644_v46 = vadd.f32 %v643_v44, %v1646_v55 }
 0x2c9   :  { %v756_v17 = vmax.f32 %v718_v45, 0.0 }
 0x2ca   :  { %v661_v48 = vmax.f32 %v644_v46, 0.0 }
 0x2cb   :  { %v771_v50 = vpack.c.bf16 %v756_v17, %v755_v39 }
 0x2cc   :  { %v669_v51 = vpack.c.bf16 %v661_v48, %v660_v47 }
 0x2cd   :  { %1032 = vmatmul.msk.bf16.vlgmr.msra.gmra.mxu3 %vm351_vm2, %v771_v50 }
 0x2ce   :  { %1023 = vmatmul.msk.bf16.gmra.mxu2 %vm111_vm0, %v669_v51  ;;  %v720_v52 = vpop.f32.mrf.mxu2 }
 0x2cf   :  { %v721_v53 = vadd.f32 %v720_v52, %v1689_v40 }
 0x2d1   :  { %v757_v54 = vmax.f32 %v721_v53, 0.0 }
 0x2d6   :  { %v722_v37 = vpop.f32.mrf.mxu2 }
 0x2d7   :  { %v723_v38 = vadd.f32 %v722_v37, %v1689_v40 }
 0x2d9   :  { %v758_v56 = vmax.f32 %v723_v38, 0.0 }
 0x2db   :  { %v772_v57 = vpack.c.bf16 %v758_v56, %v757_v54 }
 0x2dd   :  { %1033 = vmatmul.msk.bf16.gmra.mxu3 %vm351_vm2, %v772_v57 }
 0x2de   :  { %v725_v55 = vpop.f32.mrf.mxu2 }
 0x2df   :  { %v726_v58 = vadd.f32 %v725_v55, %v1689_v40 }
 0x2e1   :  { %v759_v59 = vmax.f32 %v726_v58, 0.0 }
 0x2e6   :  { %v727_v25 = vpop.f32.mrf.mxu2 }
 0x2e7   :  { %v728_v28 = vadd.f32 %v727_v25, %v1689_v40 }
 0x2e9   :  { %v760_v9 = vmax.f32 %v728_v28, 0.0 }
 0x2eb   :  { %v773_v60 = vpack.c.bf16 %v760_v9, %v759_v59 }
 0x2ed   :  { %1034 = vmatmul.msk.bf16.gmra.mxu3 %vm351_vm2, %v773_v60 }
 0x301   :  { %v730_v10 = vpop.f32.mrf.mxu2 }
 0x302   :  { %v731_v15 = vadd.f32 %v730_v10, %v1689_v40 }
 0x304   :  { %v761_v63 = vmax.f32 %v731_v15, 0.0 }
 0x309   :  { %v732_v61 = vpop.f32.mrf.mxu2 }
 0x30a   :  { %v733_v62 = vadd.f32 %v732_v61, %v1689_v40 }
 0x30c   :  { %v762_v2 = vmax.f32 %v733_v62, 0.0 }
 0x30e   :  { %v774_v3 = vpack.c.bf16 %v762_v2, %v761_v63 }
 0x310   :  { %1035 = vmatmul.msk.bf16.gmra.mxu3 %vm351_vm2, %v774_v3 }
 0x320   :  { %v735_v4 = vpop.f32.mrf.mxu2 }
 0x321   :  { %v736_v5 = vadd.f32 %v735_v4, %v1689_v40 }
 0x323   :  { %v763_v16 = vmax.f32 %v736_v5, 0.0 }
 0x328   :  { %v737_v6 = vpop.f32.mrf.mxu2 }
 0x329   :  { %v738_v7 = vadd.f32 %v737_v6, %v1689_v40 }
 0x32b   :  { %v764_v8 = vmax.f32 %v738_v7, 0.0 }
 0x32d   :  { %v775_v12 = vpack.c.bf16 %v764_v8, %v763_v16 }
 0x32f   :  { %1036 = vmatmul.msk.bf16.gmra.mxu3 %vm351_vm2, %v775_v12 }
 0x331   :  { %v740_v11 = vpop.f32.mrf.mxu2 }
 0x332   :  { %v741_v13 = vadd.f32 %v740_v11, %v1689_v40 }
 0x334   :  { %v765_v0 = vmax.f32 %v741_v13, 0.0 }
 0x339   :  { %v742_v14 = vpop.f32.mrf.mxu2 }
 0x33a   :  { %v743_v42 = vadd.f32 %v742_v14, %v1689_v40 }
 0x33c   :  { %v766_v1 = vmax.f32 %v743_v42, 0.0 }
 0x33e   :  { %v776_v18 = vpack.c.bf16 %v766_v1, %v765_v0 }
 0x340   :  { %1037 = vmatmul.msk.bf16.gmra.mxu3 %vm351_vm2, %v776_v18 }
 0x341   :  { %v745_v19 = vpop.f32.mrf.mxu2 }
 0x342   :  { %v746_v20 = vadd.f32 %v745_v19, %v1689_v40 }
 0x344   :  { %v767_v23 = vmax.f32 %v746_v20, 0.0 }
 0x349   :  { %v747_v21 = vpop.f32.mrf.mxu2 }
 0x34a   :  { %v748_v22 = vadd.f32 %v747_v21, %v1689_v40 }
 0x34c   :  { %v768_v24 = vmax.f32 %v748_v22, 0.0 }
 0x34e   :  { %v777_v29 = vpack.c.bf16 %v768_v24, %v767_v23 }
 0x350   :  { %1038 = vmatmul.msk.bf16.gmra.mxu3 %vm351_vm2, %v777_v29  ;;  %v833_v30 = vpop.f32.mrf.mxu3 }
 0x351   :  { %v750_v27 = vpop.f32.mrf.mxu2  ;;  %v834_v31 = vadd.f32 %v833_v30, %v783_v26 }
 0x352   :  { %v751_v33 = vadd.f32 %v750_v27, %v1689_v40 }
 0x353   :  { %v873_v43 = vmax.f32 %v834_v31, 0.0 }
 0x354   :  { %v769_v45 = vmax.f32 %v751_v33, 0.0 }
 0x358   :  { %v835_v35 = vpop.f32.mrf.mxu3 }
 0x359   :  { %v752_v36 = vpop.f32.mrf.mxu2  ;;  %v836_v49 = vadd.f32 %v835_v35, %v783_v26  ;;  %v889_v35 = vld [vmem:[%s1740_s2 + $0x28] sm:$0x4] }
 0x35a   :  { %v753_v41 = vadd.f32 %v752_v36, %v1689_v40 }
 0x35b   :  { %v874_v44 = vmax.f32 %v836_v49, 0.0  ;;  %v898_v49 = vunpack.c.l.bf16 %v889_v35 }
 0x35c   :  { %v770_v46 = vmax.f32 %v753_v41, 0.0 }
 0x35d   :  { %v1719_v39 = vpack.c.bf16 %v874_v44, %v873_v43  ;;  %v904_v44 = vunpack.c.l.b16 %v889_v35 }
 0x35e   :  { %v778_v17 = vpack.c.bf16 %v770_v46, %v769_v45 }
 0x35f   :  { %v905_v45 = vpack.c.b16 %v904_v44, %v904_v44  ;;  %v916_v46 = vsel %vm334_vm1, %v1719_v39, 0 }
 0x360   :  { %1039 = vmatmul.msk.bf16.gmra.mxu3 %vm351_vm2, %v778_v17  ;;  %v838_v47 = vpop.f32.mrf.mxu3 }
 0x361   :  { %v839_v32 = vadd.f32 %v838_v47, %v783_v26  ;;  %v907_v17 = vshrl.u32 %v905_v45, 16 }
 0x363   :  { %v875_v50 = vmax.f32 %v839_v32, 0.0  ;;  %v909_v47 = vrot.slane %v907_v17, 2 }
 0x368   :  { %v840_v34 = vpop.f32.mrf.mxu3 }
 0x369   :  { %v841_v48 = vadd.f32 %v840_v34, %v783_v26 }
 0x36b   :  { %v876_v51 = vmax.f32 %v841_v48, 0.0 }
 0x36d   :  { %v891_v52 = vpack.c.bf16 %v876_v51, %v875_v50 }
 0x36f   :  { %v919_v43 = vsel %vm334_vm1, %v891_v52, 0 }
 0x370   :  { %v843_v53 = vpop.f32.mrf.mxu3 }
 0x371   :  { %v844_v37 = vadd.f32 %v843_v53, %v783_v26 }
 0x373   :  { %v877_v54 = vmax.f32 %v844_v37, 0.0 }
 0x378   :  { %v845_v38 = vpop.f32.mrf.mxu3 }
 0x379   :  { %v846_v40 = vadd.f32 %v845_v38, %v783_v26 }
 0x37b   :  { %v878_v56 = vmax.f32 %v846_v40, 0.0 }
 0x37d   :  { %v892_v57 = vpack.c.bf16 %v878_v56, %v877_v54 }
 0x37f   :  { %v922_v41 = vsel %vm334_vm1, %v892_v57, 0 }
 0x393   :  { %v848_v55 = vpop.f32.mrf.mxu3 }
 0x394   :  { %v849_v58 = vadd.f32 %v848_v55, %v783_v26 }
 0x396   :  { %v879_v59 = vmax.f32 %v849_v58, 0.0 }
 0x39b   :  { %v850_v25 = vpop.f32.mrf.mxu3 }
 0x39c   :  { %v851_v28 = vadd.f32 %v850_v25, %v783_v26 }
 0x39e   :  { %v880_v9 = vmax.f32 %v851_v28, 0.0 }
 0x3a0   :  { %v893_v60 = vpack.c.bf16 %v880_v9, %v879_v59 }
 0x3a2   :  { %v925_v36 = vsel %vm334_vm1, %v893_v60, 0 }
 0x3b2   :  { %v853_v10 = vpop.f32.mrf.mxu3 }
 0x3b3   :  { %v854_v15 = vadd.f32 %v853_v10, %v783_v26 }
 0x3b5   :  { %v881_v63 = vmax.f32 %v854_v15, 0.0 }
 0x3ba   :  { %v855_v61 = vpop.f32.mrf.mxu3 }
 0x3bb   :  { %v856_v62 = vadd.f32 %v855_v61, %v783_v26 }
 0x3bd   :  { %v882_v2 = vmax.f32 %v856_v62, 0.0 }
 0x3bf   :  { %v894_v3 = vpack.c.bf16 %v882_v2, %v881_v63 }
 0x3c1   :  { %v928_v33 = vsel %vm334_vm1, %v894_v3, 0 }
 0x3c3   :  { %v858_v4 = vpop.f32.mrf.mxu3 }
 0x3c4   :  { %v859_v23 = vadd.f32 %v858_v4, %v783_v26 }
 0x3c6   :  { %v883_v30 = vmax.f32 %v859_v23, 0.0 }
 0x3cb   :  { %v860_v5 = vpop.f32.mrf.mxu3 }
 0x3cc   :  { %v861_v21 = vadd.f32 %v860_v5, %v783_v26 }
 0x3ce   :  { %v884_v24 = vmax.f32 %v861_v21, 0.0 }
 0x3d0   :  { %v895_v27 = vpack.c.bf16 %v884_v24, %v883_v30 }
 0x3d2   :  { %v931_v31 = vsel %vm334_vm1, %v895_v27, 0 }
 0x3d3   :  { %v863_v6 = vpop.f32.mrf.mxu3 }
 0x3d4   :  { %v864_v0 = vadd.f32 %v863_v6, %v783_v26 }
 0x3d6   :  { %v885_v20 = vmax.f32 %v864_v0, 0.0 }
 0x3db   :  { %v865_v7 = vpop.f32.mrf.mxu3 }
 0x3dc   :  { %v866_v13 = vadd.f32 %v865_v7, %v783_v26 }
 0x3de   :  { %v886_v18 = vmax.f32 %v866_v13, 0.0 }
 0x3e0   :  { %v896_v22 = vpack.c.bf16 %v886_v18, %v885_v20 }
 0x3e2   :  { %v934_v29 = vsel %vm334_vm1, %v896_v22, 0 }
 0x3e3   :  { %v868_v16 = vpop.f32.mrf.mxu3 }
 0x3e4   :  { %v869_v8 = vadd.f32 %v868_v16, %v783_v26 }
 0x3e6   :  { %v887_v14 = vmax.f32 %v869_v8, 0.0 }
 0x3eb   :  { %v870_v12 = vpop.f32.mrf.mxu3 }
 0x3ec   :  { %v871_v11 = vadd.f32 %v870_v12, %v783_v26  ;;  %v1267_v26 = vmov 0  }
 0x3ed   :  { %1254 = vset.pattern.permute.xlu0 %v1267_v26 }
 0x3ee   :  { %v888_v42 = vmax.f32 %v871_v11, 0.0  ;;  %901 = vperm.xlu0 %1254, %v898_v49  }
 0x3f0   :  { %v897_v1 = vpack.c.bf16 %v888_v42, %v887_v14 }
 0x3f2   :  { %v937_v19 = vsel %vm334_vm1, %v897_v1, 0 }
 0x3f3   :  { %939 = vmatpush.bf16.xpose.msrb.mxu2 %v937_v19 }
 0x3fb   :  { %940 = vmatpush.bf16.xpose.msrb.mxu2 %v934_v29 }
 0x403   :  { %941 = vmatpush.bf16.xpose.msrb.mxu2 %v931_v31 }
 0x40b   :  { %942 = vmatpush.bf16.xpose.msrb.mxu2 %v928_v33 }
 0x413   :  { %943 = vmatpush.bf16.xpose.msrb.mxu2 %v925_v36 }
 0x41b   :  { %944 = vmatpush.bf16.xpose.msrb.mxu2 %v922_v41 }
 0x423   :  { %945 = vmatpush.bf16.xpose.msrb.mxu2 %v919_v43 }
 0x42b   :  { %946 = vmatpush.bf16.xpose.msrb.mxu2 %v916_v46 }
 0x432   :  { %1040 = vmatmul.msk.bf16.vlgmr.msrb.gmra.mxu2 %vm334_vm1, %v909_v47 }
 0x460   :  { %v902_v32 = vpop.permute.xlu0 %901 }
 0x461   :  { %v910_v34 = vrot.slane %v902_v32, 4 }
 0x4b5   :  { %v948_v48 = vpop.f32.mrf.mxu2 }
 0x4b6   :  { %v949_v50 = vadd.f32 %v948_v48, %v910_v34 }
 0x4b8   :  { %v1041_v51 = vmul.f32 -1.442695, %v949_v50 }
 0x4ba   :  { %1255 = vpow2.f32 %v1041_v51 }
 0x4bd   :  { %v950_v53 = vpop.f32.mrf.mxu2 }
 0x4c0   :  { %v1256_v37 = vpop.eup %1255 }
 0x4c1   :  { %v955_v52 = vadd.f32 1.0, %v1256_v37 }
 0x4c3   :  { %1257 = vrcp.f32 %v955_v52  ;;  %v967_v56 = vand.u32 2147483648, %v955_v52  ;;  %v965_v57 = vand.u32 2147483647, %v955_v52  ;;  %vm961_vm9 = vweird.f32 %v955_v52 }
 0x4c5   :  { %v968_v58 = vor.u32 1.1754944e-38, %v967_v56  ;;  %vm966_vm11 = vcmp.eq.f32.partialorder %v965_v57, 8.507059e+37 }
 0x4c9   :  { %v1258_v38 = vpop.eup %1257 }
 0x4ca   :  { %v957_v40 = vmul.f32 %v1258_v38, %v955_v52  ;;  %vm962_vm8 = vweird.f32 %v1258_v38 }
 0x4cb   :  { %vm963_vm10 = vmor %vm961_vm9, %vm962_vm8 }
 0x4cc   :  { %v958_v54 = vsub.f32 1.0, %v957_v40 }
 0x4ce   :  { %v959_v39 = vmul.f32 %v1258_v38, %v958_v54 }
 0x4d0   :  { %v960_v55 = vadd.f32 %v1258_v38, %v959_v39 }
 0x4d2   :  { %v964_v25 = vsel %vm963_vm10, %v1258_v38, %v960_v55 }
 0x4d3   :  { %v969_v28 = vsel %vm966_vm11, %v968_v58, %v964_v25 }
 0x4d4   :  { %971 = vst [vmem:[%s1741_s3] sm:$0x1] %v969_v28 }

</bundles_post_ra>
